<compile_context>
chip_gen: v7x
topology: tpu7x:2x2x1
jax: 0.10.0
libtpu: 0.0.40
codegen_flags: <defaults>
</compile_context>

<pallas_src>
import functools

import jax
import jax.numpy as jnp
from jax import lax
from jax.experimental import pallas as pl
from jax.experimental.pallas import tpu as pltpu


def lstm_kernel(x_ref, wih_ref, whh_ref, b_ref, wlin_ref, blin_ref,
                out_ref, gx_ref, h_ref, c_ref,
                *, Tc, Bt, H, compute_dtype, precision, unroll):
    t_chunk = pl.program_id(1)

    # Fresh (h, c) at the start of every batch tile's time loop.
    @pl.when(t_chunk == 0)
    def _():
        h_ref[...] = jnp.zeros_like(h_ref)
        c_ref[...] = jnp.zeros_like(c_ref)

    # Hoisted input projection for this time chunk: one MXU matmul covering all
    # Tc timesteps (bias folded in; g-gate columns pre-scaled by 2 in wrapper).
    gx_ref[...] = (jnp.dot(x_ref[...], wih_ref[...],
                           preferred_element_type=jnp.float32,
                           precision=precision)
                   + b_ref[...]).astype(gx_ref.dtype)

    whh = whh_ref[...]                              # (H, 4H), loop-invariant
    # TODO(synk): keep W_hh staged in the MXU across the loop with
    # pltpu.matmul_push_rhs / matmul_acc_lhs / matmul_pop (or confirm from the
    # bundle dump that the unrolled loop already hoists the RHS weight load).

    def step(t, carry):
        h, c = carry                                # (Bt, H) f32
        base = pl.multiple_of(t * Bt, Bt)           # sublane-aligned gx slice
        gates = (gx_ref[pl.ds(base, Bt), :].astype(jnp.float32)
                 + jnp.dot(h.astype(compute_dtype), whh,
                           preferred_element_type=jnp.float32,
                           precision=precision))

        # Single EUP pass over the whole (Bt, 4H) vreg: the g-gate block was
        # pre-scaled by 2, so tanh(g) == 2*sigmoid(2g) - 1 comes from the same
        # sigmoid as i/f/o.  Gate order is PyTorch's [i, f, g, o].
        sig = jax.nn.sigmoid(gates)
        i_g = sig[:, 0 * H:1 * H]
        f_g = sig[:, 1 * H:2 * H]
        g_g = 2.0 * sig[:, 2 * H:3 * H] - 1.0
        o_g = sig[:, 3 * H:4 * H]

        c_new = f_g * c + i_g * g_g
        h_new = o_g * jnp.tanh(c_new)
        return h_new, c_new

    h_T, c_T = lax.fori_loop(0, Tc, step, (h_ref[...], c_ref[...]),
                             unroll=unroll)
    h_ref[...] = h_T                                # carry to next time chunk
    c_ref[...] = c_T

    # Final Linear(H, 1) on the last h, padded to 128 output lanes so the
    # single store is lane-dense (no masked vst).
    @pl.when(t_chunk == pl.num_programs(1) - 1)
    def _():
        out_ref[...] = (jnp.dot(h_T.astype(compute_dtype), wlin_ref[...],
                                preferred_element_type=jnp.float32,
                                precision=precision)
                        + blin_ref[...]).astype(out_ref.dtype)


def lstm_forward(x_btI, w_ih, w_hh, b_ih, b_hh, w_lin, b_lin, *,
                 compute_dtype=jnp.bfloat16, time_chunk=64, unroll=8,
                 precision=None):
    """x_btI: (B, T, I) float32 -- same batch_first layout as the PyTorch module.

    compute_dtype: dtype fed to the MXU (bf16 recommended on v6e/v7x; f32 also
    supported).  Accumulation and gate/cell math are always f32 (v5e's VPU/EUP
    have no bf16, so the elementwise path stays f32 on every generation).
    precision: matmul precision; for large I/H/T pass
    jax.lax.Precision.HIGHEST with compute_dtype=float32 to match an f32
    reference tightly (default bf16-pass decomposition is fine at small sizes).
    """
    B, T, I = x_btI.shape
    H4 = w_ih.shape[0]
    H = H4 // 4

    SUB, LANE = 8, 128
    Bt = SUB                                    # batch tile = one sublane tile
    NB = pl.cdiv(B, Bt)                         # parallel grid axis (v7x 2 TCs)
    Bp = NB * Bt
    Lp = LANE                                   # lane-dense head output

    # Largest time-chunk that divides T (avoids running padded timesteps
    # through the recurrence, which would perturb (h, c)).
    Tc = 1
    for d in range(1, min(T, time_chunk) + 1):
        if T % d == 0:
            Tc = d
    NC = T // Tc

    # (B, T, I) -> (NB, NC, Tc*Bt, I): time-major inside each chunk, batch
    # padded to a sublane multiple and tiled along the parallel grid axis.
    x_p = jnp.pad(x_btI, ((0, Bp - B), (0, 0), (0, 0)))
    x_arr = (x_p.reshape(NB, Bt, NC, Tc, I)
                .transpose(0, 2, 3, 1, 4)
                .reshape(NB, NC, Tc * Bt, I)
                .astype(compute_dtype))

    # Pre-scale the g-gate block by 2 so tanh(g) == 2*sigmoid(2g) - 1 and the
    # kernel needs only one sigmoid over the whole gates vreg per step.
    wih_t = w_ih.T.astype(jnp.float32).at[:, 2 * H:3 * H].multiply(2.0)
    whh_t = w_hh.T.astype(jnp.float32).at[:, 2 * H:3 * H].multiply(2.0)
    bias = (b_ih + b_hh).astype(jnp.float32).at[2 * H:3 * H].multiply(2.0)
    wih_t = wih_t.astype(compute_dtype)         # (I, 4H)
    whh_t = whh_t.astype(compute_dtype)         # (H, 4H)
    bias = bias.reshape(1, 4 * H)               # (1, 4H) f32

    # Pad W_lin^T (H, 1) -> (H, 128) so the output store is unmasked.
    wlin_t = jnp.zeros((H, Lp), compute_dtype).at[:, :1].set(
        w_lin.T.astype(compute_dtype))
    blin = jnp.zeros((1, Lp), jnp.float32).at[:, :1].set(
        b_lin.reshape(1, 1).astype(jnp.float32))

    gx_dtype = jnp.dtype(compute_dtype)         # bf16 gx halves biggest buffer

    kernel = functools.partial(lstm_kernel, Tc=Tc, Bt=Bt, H=H,
                               compute_dtype=compute_dtype,
                               precision=precision,
                               unroll=max(1, min(unroll, Tc)))

    # Scoped-VMEM budget: chunk-x / weights / out (double-buffered) + scratch,
    # with generous headroom; bounded in T thanks to the time-chunk grid.
    csz = jnp.dtype(compute_dtype).itemsize
    bytes_live = 2 * (Tc * Bt * I * csz                       # x chunk
                      + I * 4 * H * csz + H * 4 * H * csz + 4 * H * 4
                      + H * Lp * csz + Lp * 4
                      + Bt * Lp * 4)                          # out tile
    bytes_live += Tc * Bt * 4 * H * gx_dtype.itemsize + 2 * Bt * H * 4
    vmem_limit = int(min(100 * 2 ** 20, max(8 * 2 ** 20, 4 * bytes_live)))

    grid_spec = pltpu.PrefetchScalarGridSpec(
        num_scalar_prefetch=0,
        grid=(NB, NC),
        in_specs=[
            pl.BlockSpec((None, None, Tc * Bt, I), lambda b, t: (b, t, 0, 0)),
            pl.BlockSpec((I, 4 * H), lambda b, t: (0, 0)),
            pl.BlockSpec((H, 4 * H), lambda b, t: (0, 0)),
            pl.BlockSpec((1, 4 * H), lambda b, t: (0, 0)),
            pl.BlockSpec((H, Lp), lambda b, t: (0, 0)),
            pl.BlockSpec((1, Lp), lambda b, t: (0, 0)),
        ],
        out_specs=pl.BlockSpec((None, Bt, Lp), lambda b, t: (b, 0, 0)),
        scratch_shapes=[
            pltpu.VMEM((Tc * Bt, 4 * H), gx_dtype),   # hoisted gates_x (chunk)
            pltpu.VMEM((Bt, H), jnp.float32),         # h carry
            pltpu.VMEM((Bt, H), jnp.float32),         # c carry
        ],
    )

    out = pl.pallas_call(
        kernel,
        out_shape=jax.ShapeDtypeStruct((NB, Bt, Lp), jnp.float32),
        grid_spec=grid_spec,
        compiler_params=pltpu.CompilerParams(
            dimension_semantics=("parallel", "arbitrary"),
            vmem_limit_bytes=vmem_limit),
    )(x_arr, wih_t, whh_t, bias, wlin_t, blin)

    return out.reshape(NB * Bt, Lp)[:B, :1]


def lstm_reference(x_btI, w_ih, w_hh, b_ih, b_hh, w_lin, b_lin):
    """Pure-JAX f32 reference matching torch.nn.LSTM(batch_first=True) + Linear."""
    B, T, I = x_btI.shape
    H = w_hh.shape[1]
    h = jnp.zeros((B, H), jnp.float32)
    c = jnp.zeros((B, H), jnp.float32)
    for t in range(T):
        g = x_btI[:, t, :] @ w_ih.T + h @ w_hh.T + b_ih + b_hh
        i_g = jax.nn.sigmoid(g[:, 0 * H:1 * H])
        f_g = jax.nn.sigmoid(g[:, 1 * H:2 * H])
        g_g = jnp.tanh(g[:, 2 * H:3 * H])
        o_g = jax.nn.sigmoid(g[:, 3 * H:4 * H])
        c = f_g * c + i_g * g_g
        h = o_g * jnp.tanh(c)
    return h @ w_lin.T + b_lin


if __name__ == "__main__":
    B, T, I, H = 2, 8, 16, 32

    key = jax.random.PRNGKey(0)
    kx, k1, k2, k3, k4, k5, k6 = jax.random.split(key, 7)

    # Deterministic synthetic parameters (shapes follow nn.LSTM / nn.Linear).
    scale = 1.0 / jnp.sqrt(H)
    x = jax.random.normal(kx, (B, T, I), jnp.float32)
    w_ih = jax.random.uniform(k1, (4 * H, I), jnp.float32, -scale, scale)
    w_hh = jax.random.uniform(k2, (4 * H, H), jnp.float32, -scale, scale)
    b_ih = jax.random.uniform(k3, (4 * H,), jnp.float32, -scale, scale)
    b_hh = jax.random.uniform(k4, (4 * H,), jnp.float32, -scale, scale)
    w_lin = jax.random.uniform(k5, (1, H), jnp.float32, -scale, scale)
    b_lin = jax.random.uniform(k6, (1,), jnp.float32, -scale, scale)

    ref = lstm_reference(x, w_ih, w_hh, b_ih, b_hh, w_lin, b_lin)

    # f32 path — tight check against the reference
    out_f32 = lstm_forward(x, w_ih, w_hh, b_ih, b_hh, w_lin, b_lin,
                           compute_dtype=jnp.float32)
    out_f32 = jax.block_until_ready(out_f32)
    assert out_f32.shape == (B, 1)
    assert jnp.allclose(out_f32, ref, atol=1e-4, rtol=1e-4), (out_f32, ref)

    # bf16-MXU path (f32 accumulation / gate math) — loose check
    out_bf16 = lstm_forward(x, w_ih, w_hh, b_ih, b_hh, w_lin, b_lin,
                            compute_dtype=jnp.bfloat16)
    out_bf16 = jax.block_until_ready(out_bf16)
    assert out_bf16.shape == (B, 1)
    assert jnp.allclose(out_bf16, ref, atol=5e-2, rtol=5e-2), (out_bf16, ref)

    print("KERNEL_OK")
</pallas_src>

<mosaic_0001>
module attributes {stable_mosaic.version = 11 : i64} {
  func.func @lstm_kernel(%arg0: i32, %arg1: i32, %arg2: memref<1x1x64x16xf32, #tpu.memory_space<vmem>>, %arg3: memref<16x128xf32, #tpu.memory_space<vmem>>, %arg4: memref<32x128xf32, #tpu.memory_space<vmem>>, %arg5: memref<1x128xf32, #tpu.memory_space<vmem>>, %arg6: memref<32x128xf32, #tpu.memory_space<vmem>>, %arg7: memref<1x128xf32, #tpu.memory_space<vmem>>, %arg8: memref<1x8x128xf32, #tpu.memory_space<vmem>>, %arg9: memref<64x128xf32, #tpu.memory_space<vmem>>, %arg10: memref<8x32xf32, #tpu.memory_space<vmem>>, %arg11: memref<8x32xf32, #tpu.memory_space<vmem>>) attributes {dimension_semantics = [#tpu.dimension_semantics<parallel>, #tpu.dimension_semantics<arbitrary>], iteration_bounds = array<i64: 1, 1>, scalar_prefetch = 0 : i64, scratch_operands = 3 : i64, tpu.core_type = #tpu.core_type<tc>, window_params = [{transform_indices = @transform_0, window_bounds = array<i64: 1, 1, 64, 16>}, {pipeline_mode = #tpu.pipeline_mode<synchronous>, transform_indices = @transform_1, window_bounds = array<i64: 16, 128>}, {pipeline_mode = #tpu.pipeline_mode<synchronous>, transform_indices = @transform_2, window_bounds = array<i64: 32, 128>}, {pipeline_mode = #tpu.pipeline_mode<synchronous>, transform_indices = @transform_3, window_bounds = array<i64: 1, 128>}, {pipeline_mode = #tpu.pipeline_mode<synchronous>, transform_indices = @transform_4, window_bounds = array<i64: 32, 128>}, {pipeline_mode = #tpu.pipeline_mode<synchronous>, transform_indices = @transform_5, window_bounds = array<i64: 1, 128>}, {transform_indices = @transform_6, window_bounds = array<i64: 1, 8, 128>}]} {
    %c0_i32 = arith.constant 0 : i32
    %0 = arith.cmpi eq, %arg1, %c0_i32 : i32
    %1 = arith.extui %0 : i1 to i32
    %c0_i32_0 = arith.constant 0 : i32
    %2 = arith.cmpi ne, %1, %c0_i32_0 : i32
    scf.if %2 {
      %cst_71 = arith.constant 0.000000e+00 : f32
      %211 = vector.broadcast %cst_71 : f32 to vector<8x32xf32>
      %c0_72 = arith.constant 0 : index
      %c0_73 = arith.constant 0 : index
      %212 = vector.load %arg10[%c0_72, %c0_73] : memref<8x32xf32, #tpu.memory_space<vmem>>, vector<8x32xf32>
      tpu.vector_store %arg10[%c0_72, %c0_73], %211 {strides = array<i32>} : memref<8x32xf32, #tpu.memory_space<vmem>>, vector<8x32xf32>,
      %cst_74 = arith.constant 0.000000e+00 : f32
      %213 = vector.broadcast %cst_74 : f32 to vector<8x32xf32>
      %c0_75 = arith.constant 0 : index
      %c0_76 = arith.constant 0 : index
      %214 = vector.load %arg11[%c0_75, %c0_76] : memref<8x32xf32, #tpu.memory_space<vmem>>, vector<8x32xf32>
      tpu.vector_store %arg11[%c0_75, %c0_76], %213 {strides = array<i32>} : memref<8x32xf32, #tpu.memory_space<vmem>>, vector<8x32xf32>,
    } else {
    }
    %c0 = arith.constant 0 : index
    %c0_1 = arith.constant 0 : index
    %c0_2 = arith.constant 0 : index
    %c0_3 = arith.constant 0 : index
    %3 = vector.load %arg2[%c0, %c0_1, %c0_2, %c0_3] : memref<1x1x64x16xf32, #tpu.memory_space<vmem>>, vector<1x1x64x16xf32>
    %4 = vector.shape_cast %3 : vector<1x1x64x16xf32> to vector<64x16xf32>
    %c0_4 = arith.constant 0 : index
    %c0_5 = arith.constant 0 : index
    %5 = vector.load %arg3[%c0_4, %c0_5] : memref<16x128xf32, #tpu.memory_space<vmem>>, vector<16x128xf32>
    %cst = arith.constant dense<0.000000e+00> : vector<64x128xf32>
    %6 = tpu.matmul %4, %5, %cst {dimension_numbers = #tpu.dot_dimension_numbers<[1], [0], [0], [1], [0, 0, 1, 1], [], []>} : vector<64x16xf32>, vector<16x128xf32>, vector<64x128xf32> -> vector<64x128xf32>
    %c0_6 = arith.constant 0 : index
    %c0_7 = arith.constant 0 : index
    %7 = vector.load %arg5[%c0_6, %c0_7] : memref<1x128xf32, #tpu.memory_space<vmem>>, vector<1x128xf32>
    %8 = vector.broadcast %7 : vector<1x128xf32> to vector<64x128xf32>
    %9 = arith.addf %6, %8 : vector<64x128xf32>
    %c0_8 = arith.constant 0 : index
    %c0_9 = arith.constant 0 : index
    %10 = vector.load %arg9[%c0_8, %c0_9] : memref<64x128xf32, #tpu.memory_space<vmem>>, vector<64x128xf32>
    tpu.vector_store %arg9[%c0_8, %c0_9], %9 {strides = array<i32>} : memref<64x128xf32, #tpu.memory_space<vmem>>, vector<64x128xf32>,
    %c0_10 = arith.constant 0 : index
    %c0_11 = arith.constant 0 : index
    %11 = vector.load %arg4[%c0_10, %c0_11] : memref<32x128xf32, #tpu.memory_space<vmem>>, vector<32x128xf32>
    %c0_12 = arith.constant 0 : index
    %c0_13 = arith.constant 0 : index
    %12 = vector.load %arg10[%c0_12, %c0_13] : memref<8x32xf32, #tpu.memory_space<vmem>>, vector<8x32xf32>
    %c0_14 = arith.constant 0 : index
    %c0_15 = arith.constant 0 : index
    %13 = vector.load %arg11[%c0_14, %c0_15] : memref<8x32xf32, #tpu.memory_space<vmem>>, vector<8x32xf32>
    %c0_i32_16 = arith.constant 0 : i32
    %c8_i32 = arith.constant 8 : i32
    %14 = arith.muli %c0_i32_16, %c8_i32 : i32
    %15 = tpu.assume_multiple %14, 8 : i32
    %16 = arith.index_cast %15 : i32 to index
    %c0_17 = arith.constant 0 : index
    %17 = vector.load %arg9[%16, %c0_17] : memref<64x128xf32, #tpu.memory_space<vmem>>, vector<8x128xf32>
    %cst_18 = arith.constant dense<0.000000e+00> : vector<8x128xf32>
    %18 = tpu.matmul %12, %11, %cst_18 {dimension_numbers = #tpu.dot_dimension_numbers<[1], [0], [0], [1], [0, 0, 1, 1], [], []>} : vector<8x32xf32>, vector<32x128xf32>, vector<8x128xf32> -> vector<8x128xf32>
    %19 = arith.addf %17, %18 : vector<8x128xf32>
    %20 = arith.negf %19 : vector<8x128xf32>
    %21 = math.exp %20 : vector<8x128xf32>
    %cst_19 = arith.constant 1.000000e+00 : f32
    %22 = vector.broadcast %cst_19 : f32 to vector<8x128xf32>
    %23 = arith.addf %22, %21 : vector<8x128xf32>
    %24 = arith.divf %22, %23 : vector<8x128xf32>
    %25 = vector.extract_strided_slice %24 {offsets = [0, 0], sizes = [8, 32], strides = [1, 1]} : vector<8x128xf32> to vector<8x32xf32>
    %26 = vector.extract_strided_slice %24 {offsets = [0, 32], sizes = [8, 32], strides = [1, 1]} : vector<8x128xf32> to vector<8x32xf32>
    %27 = vector.extract_strided_slice %24 {offsets = [0, 64], sizes = [8, 32], strides = [1, 1]} : vector<8x128xf32> to vector<8x32xf32>
    %cst_20 = arith.constant 2.000000e+00 : f32
    %28 = vector.broadcast %cst_20 : f32 to vector<8x32xf32>
    %29 = arith.mulf %28, %27 : vector<8x32xf32>
    %cst_21 = arith.constant 1.000000e+00 : f32
    %30 = vector.broadcast %cst_21 : f32 to vector<8x32xf32>
    %31 = arith.subf %29, %30 : vector<8x32xf32>
    %32 = vector.extract_strided_slice %24 {offsets = [0, 96], sizes = [8, 32], strides = [1, 1]} : vector<8x128xf32> to vector<8x32xf32>
    %33 = arith.mulf %26, %13 : vector<8x32xf32>
    %34 = arith.mulf %25, %31 : vector<8x32xf32>
    %35 = arith.addf %33, %34 : vector<8x32xf32>
    %36 = math.tanh %35 : vector<8x32xf32>
    %37 = arith.mulf %32, %36 : vector<8x32xf32>
    %c1_i32 = arith.constant 1 : i32
    %c8_i32_22 = arith.constant 8 : i32
    %38 = arith.muli %c1_i32, %c8_i32_22 : i32
    %39 = tpu.assume_multiple %38, 8 : i32
    %40 = arith.index_cast %39 : i32 to index
    %c0_23 = arith.constant 0 : index
    %41 = vector.load %arg9[%40, %c0_23] : memref<64x128xf32, #tpu.memory_space<vmem>>, vector<8x128xf32>
    %cst_24 = arith.constant dense<0.000000e+00> : vector<8x128xf32>
    %42 = tpu.matmul %37, %11, %cst_24 {dimension_numbers = #tpu.dot_dimension_numbers<[1], [0], [0], [1], [0, 0, 1, 1], [], []>} : vector<8x32xf32>, vector<32x128xf32>, vector<8x128xf32> -> vector<8x128xf32>
    %43 = arith.addf %41, %42 : vector<8x128xf32>
    %44 = arith.negf %43 : vector<8x128xf32>
    %45 = math.exp %44 : vector<8x128xf32>
    %cst_25 = arith.constant 1.000000e+00 : f32
    %46 = vector.broadcast %cst_25 : f32 to vector<8x128xf32>
    %47 = arith.addf %46, %45 : vector<8x128xf32>
    %48 = arith.divf %46, %47 : vector<8x128xf32>
    %49 = vector.extract_strided_slice %48 {offsets = [0, 0], sizes = [8, 32], strides = [1, 1]} : vector<8x128xf32> to vector<8x32xf32>
    %50 = vector.extract_strided_slice %48 {offsets = [0, 32], sizes = [8, 32], strides = [1, 1]} : vector<8x128xf32> to vector<8x32xf32>
    %51 = vector.extract_strided_slice %48 {offsets = [0, 64], sizes = [8, 32], strides = [1, 1]} : vector<8x128xf32> to vector<8x32xf32>
    %cst_26 = arith.constant 2.000000e+00 : f32
    %52 = vector.broadcast %cst_26 : f32 to vector<8x32xf32>
    %53 = arith.mulf %52, %51 : vector<8x32xf32>
    %cst_27 = arith.constant 1.000000e+00 : f32
    %54 = vector.broadcast %cst_27 : f32 to vector<8x32xf32>
    %55 = arith.subf %53, %54 : vector<8x32xf32>
    %56 = vector.extract_strided_slice %48 {offsets = [0, 96], sizes = [8, 32], strides = [1, 1]} : vector<8x128xf32> to vector<8x32xf32>
    %57 = arith.mulf %50, %35 : vector<8x32xf32>
    %58 = arith.mulf %49, %55 : vector<8x32xf32>
    %59 = arith.addf %57, %58 : vector<8x32xf32>
    %60 = math.tanh %59 : vector<8x32xf32>
    %61 = arith.mulf %56, %60 : vector<8x32xf32>
    %c2_i32 = arith.constant 2 : i32
    %c8_i32_28 = arith.constant 8 : i32
    %62 = arith.muli %c2_i32, %c8_i32_28 : i32
    %63 = tpu.assume_multiple %62, 8 : i32
    %64 = arith.index_cast %63 : i32 to index
    %c0_29 = arith.constant 0 : index
    %65 = vector.load %arg9[%64, %c0_29] : memref<64x128xf32, #tpu.memory_space<vmem>>, vector<8x128xf32>
    %cst_30 = arith.constant dense<0.000000e+00> : vector<8x128xf32>
    %66 = tpu.matmul %61, %11, %cst_30 {dimension_numbers = #tpu.dot_dimension_numbers<[1], [0], [0], [1], [0, 0, 1, 1], [], []>} : vector<8x32xf32>, vector<32x128xf32>, vector<8x128xf32> -> vector<8x128xf32>
    %67 = arith.addf %65, %66 : vector<8x128xf32>
    %68 = arith.negf %67 : vector<8x128xf32>
    %69 = math.exp %68 : vector<8x128xf32>
    %cst_31 = arith.constant 1.000000e+00 : f32
    %70 = vector.broadcast %cst_31 : f32 to vector<8x128xf32>
    %71 = arith.addf %70, %69 : vector<8x128xf32>
    %72 = arith.divf %70, %71 : vector<8x128xf32>
    %73 = vector.extract_strided_slice %72 {offsets = [0, 0], sizes = [8, 32], strides = [1, 1]} : vector<8x128xf32> to vector<8x32xf32>
    %74 = vector.extract_strided_slice %72 {offsets = [0, 32], sizes = [8, 32], strides = [1, 1]} : vector<8x128xf32> to vector<8x32xf32>
    %75 = vector.extract_strided_slice %72 {offsets = [0, 64], sizes = [8, 32], strides = [1, 1]} : vector<8x128xf32> to vector<8x32xf32>
    %cst_32 = arith.constant 2.000000e+00 : f32
    %76 = vector.broadcast %cst_32 : f32 to vector<8x32xf32>
    %77 = arith.mulf %76, %75 : vector<8x32xf32>
    %cst_33 = arith.constant 1.000000e+00 : f32
    %78 = vector.broadcast %cst_33 : f32 to vector<8x32xf32>
    %79 = arith.subf %77, %78 : vector<8x32xf32>
    %80 = vector.extract_strided_slice %72 {offsets = [0, 96], sizes = [8, 32], strides = [1, 1]} : vector<8x128xf32> to vector<8x32xf32>
    %81 = arith.mulf %74, %59 : vector<8x32xf32>
    %82 = arith.mulf %73, %79 : vector<8x32xf32>
    %83 = arith.addf %81, %82 : vector<8x32xf32>
    %84 = math.tanh %83 : vector<8x32xf32>
    %85 = arith.mulf %80, %84 : vector<8x32xf32>
    %c3_i32 = arith.constant 3 : i32
    %c8_i32_34 = arith.constant 8 : i32
    %86 = arith.muli %c3_i32, %c8_i32_34 : i32
    %87 = tpu.assume_multiple %86, 8 : i32
    %88 = arith.index_cast %87 : i32 to index
    %c0_35 = arith.constant 0 : index
    %89 = vector.load %arg9[%88, %c0_35] : memref<64x128xf32, #tpu.memory_space<vmem>>, vector<8x128xf32>
    %cst_36 = arith.constant dense<0.000000e+00> : vector<8x128xf32>
    %90 = tpu.matmul %85, %11, %cst_36 {dimension_numbers = #tpu.dot_dimension_numbers<[1], [0], [0], [1], [0, 0, 1, 1], [], []>} : vector<8x32xf32>, vector<32x128xf32>, vector<8x128xf32> -> vector<8x128xf32>
    %91 = arith.addf %89, %90 : vector<8x128xf32>
    %92 = arith.negf %91 : vector<8x128xf32>
    %93 = math.exp %92 : vector<8x128xf32>
    %cst_37 = arith.constant 1.000000e+00 : f32
    %94 = vector.broadcast %cst_37 : f32 to vector<8x128xf32>
    %95 = arith.addf %94, %93 : vector<8x128xf32>
    %96 = arith.divf %94, %95 : vector<8x128xf32>
    %97 = vector.extract_strided_slice %96 {offsets = [0, 0], sizes = [8, 32], strides = [1, 1]} : vector<8x128xf32> to vector<8x32xf32>
    %98 = vector.extract_strided_slice %96 {offsets = [0, 32], sizes = [8, 32], strides = [1, 1]} : vector<8x128xf32> to vector<8x32xf32>
    %99 = vector.extract_strided_slice %96 {offsets = [0, 64], sizes = [8, 32], strides = [1, 1]} : vector<8x128xf32> to vector<8x32xf32>
    %cst_38 = arith.constant 2.000000e+00 : f32
    %100 = vector.broadcast %cst_38 : f32 to vector<8x32xf32>
    %101 = arith.mulf %100, %99 : vector<8x32xf32>
    %cst_39 = arith.constant 1.000000e+00 : f32
    %102 = vector.broadcast %cst_39 : f32 to vector<8x32xf32>
    %103 = arith.subf %101, %102 : vector<8x32xf32>
    %104 = vector.extract_strided_slice %96 {offsets = [0, 96], sizes = [8, 32], strides = [1, 1]} : vector<8x128xf32> to vector<8x32xf32>
    %105 = arith.mulf %98, %83 : vector<8x32xf32>
    %106 = arith.mulf %97, %103 : vector<8x32xf32>
    %107 = arith.addf %105, %106 : vector<8x32xf32>
    %108 = math.tanh %107 : vector<8x32xf32>
    %109 = arith.mulf %104, %108 : vector<8x32xf32>
    %c4_i32 = arith.constant 4 : i32
    %c8_i32_40 = arith.constant 8 : i32
    %110 = arith.muli %c4_i32, %c8_i32_40 : i32
    %111 = tpu.assume_multiple %110, 8 : i32
    %112 = arith.index_cast %111 : i32 to index
    %c0_41 = arith.constant 0 : index
    %113 = vector.load %arg9[%112, %c0_41] : memref<64x128xf32, #tpu.memory_space<vmem>>, vector<8x128xf32>
    %cst_42 = arith.constant dense<0.000000e+00> : vector<8x128xf32>
    %114 = tpu.matmul %109, %11, %cst_42 {dimension_numbers = #tpu.dot_dimension_numbers<[1], [0], [0], [1], [0, 0, 1, 1], [], []>} : vector<8x32xf32>, vector<32x128xf32>, vector<8x128xf32> -> vector<8x128xf32>
    %115 = arith.addf %113, %114 : vector<8x128xf32>
    %116 = arith.negf %115 : vector<8x128xf32>
    %117 = math.exp %116 : vector<8x128xf32>
    %cst_43 = arith.constant 1.000000e+00 : f32
    %118 = vector.broadcast %cst_43 : f32 to vector<8x128xf32>
    %119 = arith.addf %118, %117 : vector<8x128xf32>
    %120 = arith.divf %118, %119 : vector<8x128xf32>
    %121 = vector.extract_strided_slice %120 {offsets = [0, 0], sizes = [8, 32], strides = [1, 1]} : vector<8x128xf32> to vector<8x32xf32>
    %122 = vector.extract_strided_slice %120 {offsets = [0, 32], sizes = [8, 32], strides = [1, 1]} : vector<8x128xf32> to vector<8x32xf32>
    %123 = vector.extract_strided_slice %120 {offsets = [0, 64], sizes = [8, 32], strides = [1, 1]} : vector<8x128xf32> to vector<8x32xf32>
    %cst_44 = arith.constant 2.000000e+00 : f32
    %124 = vector.broadcast %cst_44 : f32 to vector<8x32xf32>
    %125 = arith.mulf %124, %123 : vector<8x32xf32>
    %cst_45 = arith.constant 1.000000e+00 : f32
    %126 = vector.broadcast %cst_45 : f32 to vector<8x32xf32>
    %127 = arith.subf %125, %126 : vector<8x32xf32>
    %128 = vector.extract_strided_slice %120 {offsets = [0, 96], sizes = [8, 32], strides = [1, 1]} : vector<8x128xf32> to vector<8x32xf32>
    %129 = arith.mulf %122, %107 : vector<8x32xf32>
    %130 = arith.mulf %121, %127 : vector<8x32xf32>
    %131 = arith.addf %129, %130 : vector<8x32xf32>
    %132 = math.tanh %131 : vector<8x32xf32>
    %133 = arith.mulf %128, %132 : vector<8x32xf32>
    %c5_i32 = arith.constant 5 : i32
    %c8_i32_46 = arith.constant 8 : i32
    %134 = arith.muli %c5_i32, %c8_i32_46 : i32
    %135 = tpu.assume_multiple %134, 8 : i32
    %136 = arith.index_cast %135 : i32 to index
    %c0_47 = arith.constant 0 : index
    %137 = vector.load %arg9[%136, %c0_47] : memref<64x128xf32, #tpu.memory_space<vmem>>, vector<8x128xf32>
    %cst_48 = arith.constant dense<0.000000e+00> : vector<8x128xf32>
    %138 = tpu.matmul %133, %11, %cst_48 {dimension_numbers = #tpu.dot_dimension_numbers<[1], [0], [0], [1], [0, 0, 1, 1], [], []>} : vector<8x32xf32>, vector<32x128xf32>, vector<8x128xf32> -> vector<8x128xf32>
    %139 = arith.addf %137, %138 : vector<8x128xf32>
    %140 = arith.negf %139 : vector<8x128xf32>
    %141 = math.exp %140 : vector<8x128xf32>
    %cst_49 = arith.constant 1.000000e+00 : f32
    %142 = vector.broadcast %cst_49 : f32 to vector<8x128xf32>
    %143 = arith.addf %142, %141 : vector<8x128xf32>
    %144 = arith.divf %142, %143 : vector<8x128xf32>
    %145 = vector.extract_strided_slice %144 {offsets = [0, 0], sizes = [8, 32], strides = [1, 1]} : vector<8x128xf32> to vector<8x32xf32>
    %146 = vector.extract_strided_slice %144 {offsets = [0, 32], sizes = [8, 32], strides = [1, 1]} : vector<8x128xf32> to vector<8x32xf32>
    %147 = vector.extract_strided_slice %144 {offsets = [0, 64], sizes = [8, 32], strides = [1, 1]} : vector<8x128xf32> to vector<8x32xf32>
    %cst_50 = arith.constant 2.000000e+00 : f32
    %148 = vector.broadcast %cst_50 : f32 to vector<8x32xf32>
    %149 = arith.mulf %148, %147 : vector<8x32xf32>
    %cst_51 = arith.constant 1.000000e+00 : f32
    %150 = vector.broadcast %cst_51 : f32 to vector<8x32xf32>
    %151 = arith.subf %149, %150 : vector<8x32xf32>
    %152 = vector.extract_strided_slice %144 {offsets = [0, 96], sizes = [8, 32], strides = [1, 1]} : vector<8x128xf32> to vector<8x32xf32>
    %153 = arith.mulf %146, %131 : vector<8x32xf32>
    %154 = arith.mulf %145, %151 : vector<8x32xf32>
    %155 = arith.addf %153, %154 : vector<8x32xf32>
    %156 = math.tanh %155 : vector<8x32xf32>
    %157 = arith.mulf %152, %156 : vector<8x32xf32>
    %c6_i32 = arith.constant 6 : i32
    %c8_i32_52 = arith.constant 8 : i32
    %158 = arith.muli %c6_i32, %c8_i32_52 : i32
    %159 = tpu.assume_multiple %158, 8 : i32
    %160 = arith.index_cast %159 : i32 to index
    %c0_53 = arith.constant 0 : index
    %161 = vector.load %arg9[%160, %c0_53] : memref<64x128xf32, #tpu.memory_space<vmem>>, vector<8x128xf32>
    %cst_54 = arith.constant dense<0.000000e+00> : vector<8x128xf32>
    %162 = tpu.matmul %157, %11, %cst_54 {dimension_numbers = #tpu.dot_dimension_numbers<[1], [0], [0], [1], [0, 0, 1, 1], [], []>} : vector<8x32xf32>, vector<32x128xf32>, vector<8x128xf32> -> vector<8x128xf32>
    %163 = arith.addf %161, %162 : vector<8x128xf32>
    %164 = arith.negf %163 : vector<8x128xf32>
    %165 = math.exp %164 : vector<8x128xf32>
    %cst_55 = arith.constant 1.000000e+00 : f32
    %166 = vector.broadcast %cst_55 : f32 to vector<8x128xf32>
    %167 = arith.addf %166, %165 : vector<8x128xf32>
    %168 = arith.divf %166, %167 : vector<8x128xf32>
    %169 = vector.extract_strided_slice %168 {offsets = [0, 0], sizes = [8, 32], strides = [1, 1]} : vector<8x128xf32> to vector<8x32xf32>
    %170 = vector.extract_strided_slice %168 {offsets = [0, 32], sizes = [8, 32], strides = [1, 1]} : vector<8x128xf32> to vector<8x32xf32>
    %171 = vector.extract_strided_slice %168 {offsets = [0, 64], sizes = [8, 32], strides = [1, 1]} : vector<8x128xf32> to vector<8x32xf32>
    %cst_56 = arith.constant 2.000000e+00 : f32
    %172 = vector.broadcast %cst_56 : f32 to vector<8x32xf32>
    %173 = arith.mulf %172, %171 : vector<8x32xf32>
    %cst_57 = arith.constant 1.000000e+00 : f32
    %174 = vector.broadcast %cst_57 : f32 to vector<8x32xf32>
    %175 = arith.subf %173, %174 : vector<8x32xf32>
    %176 = vector.extract_strided_slice %168 {offsets = [0, 96], sizes = [8, 32], strides = [1, 1]} : vector<8x128xf32> to vector<8x32xf32>
    %177 = arith.mulf %170, %155 : vector<8x32xf32>
    %178 = arith.mulf %169, %175 : vector<8x32xf32>
    %179 = arith.addf %177, %178 : vector<8x32xf32>
    %180 = math.tanh %179 : vector<8x32xf32>
    %181 = arith.mulf %176, %180 : vector<8x32xf32>
    %c7_i32 = arith.constant 7 : i32
    %c8_i32_58 = arith.constant 8 : i32
    %182 = arith.muli %c7_i32, %c8_i32_58 : i32
    %183 = tpu.assume_multiple %182, 8 : i32
    %184 = arith.index_cast %183 : i32 to index
    %c0_59 = arith.constant 0 : index
    %185 = vector.load %arg9[%184, %c0_59] : memref<64x128xf32, #tpu.memory_space<vmem>>, vector<8x128xf32>
    %cst_60 = arith.constant dense<0.000000e+00> : vector<8x128xf32>
    %186 = tpu.matmul %181, %11, %cst_60 {dimension_numbers = #tpu.dot_dimension_numbers<[1], [0], [0], [1], [0, 0, 1, 1], [], []>} : vector<8x32xf32>, vector<32x128xf32>, vector<8x128xf32> -> vector<8x128xf32>
    %187 = arith.addf %185, %186 : vector<8x128xf32>
    %188 = arith.negf %187 : vector<8x128xf32>
    %189 = math.exp %188 : vector<8x128xf32>
    %cst_61 = arith.constant 1.000000e+00 : f32
    %190 = vector.broadcast %cst_61 : f32 to vector<8x128xf32>
    %191 = arith.addf %190, %189 : vector<8x128xf32>
    %192 = arith.divf %190, %191 : vector<8x128xf32>
    %193 = vector.extract_strided_slice %192 {offsets = [0, 0], sizes = [8, 32], strides = [1, 1]} : vector<8x128xf32> to vector<8x32xf32>
    %194 = vector.extract_strided_slice %192 {offsets = [0, 32], sizes = [8, 32], strides = [1, 1]} : vector<8x128xf32> to vector<8x32xf32>
    %195 = vector.extract_strided_slice %192 {offsets = [0, 64], sizes = [8, 32], strides = [1, 1]} : vector<8x128xf32> to vector<8x32xf32>
    %cst_62 = arith.constant 2.000000e+00 : f32
    %196 = vector.broadcast %cst_62 : f32 to vector<8x32xf32>
    %197 = arith.mulf %196, %195 : vector<8x32xf32>
    %cst_63 = arith.constant 1.000000e+00 : f32
    %198 = vector.broadcast %cst_63 : f32 to vector<8x32xf32>
    %199 = arith.subf %197, %198 : vector<8x32xf32>
    %200 = vector.extract_strided_slice %192 {offsets = [0, 96], sizes = [8, 32], strides = [1, 1]} : vector<8x128xf32> to vector<8x32xf32>
    %201 = arith.mulf %194, %179 : vector<8x32xf32>
    %202 = arith.mulf %193, %199 : vector<8x32xf32>
    %203 = arith.addf %201, %202 : vector<8x32xf32>
    %204 = math.tanh %203 : vector<8x32xf32>
    %205 = arith.mulf %200, %204 : vector<8x32xf32>
    %c8_i32_64 = arith.constant 8 : i32
    %c0_65 = arith.constant 0 : index
    %c0_66 = arith.constant 0 : index
    %206 = vector.load %arg10[%c0_65, %c0_66] : memref<8x32xf32, #tpu.memory_space<vmem>>, vector<8x32xf32>
    tpu.vector_store %arg10[%c0_65, %c0_66], %205 {strides = array<i32>} : memref<8x32xf32, #tpu.memory_space<vmem>>, vector<8x32xf32>,
    %c0_67 = arith.constant 0 : index
    %c0_68 = arith.constant 0 : index
    %207 = vector.load %arg11[%c0_67, %c0_68] : memref<8x32xf32, #tpu.memory_space<vmem>>, vector<8x32xf32>
    tpu.vector_store %arg11[%c0_67, %c0_68], %203 {strides = array<i32>} : memref<8x32xf32, #tpu.memory_space<vmem>>, vector<8x32xf32>,
    %c0_i32_69 = arith.constant 0 : i32
    %208 = arith.cmpi eq, %arg1, %c0_i32_69 : i32
    %209 = arith.extui %208 : i1 to i32
    %c0_i32_70 = arith.constant 0 : i32
    %210 = arith.cmpi ne, %209, %c0_i32_70 : i32
    scf.if %210 {
      %c0_71 = arith.constant 0 : index
      %c0_72 = arith.constant 0 : index
      %211 = vector.load %arg6[%c0_71, %c0_72] : memref<32x128xf32, #tpu.memory_space<vmem>>, vector<32x128xf32>
      %cst_73 = arith.constant dense<0.000000e+00> : vector<8x128xf32>
      %212 = tpu.matmul %205, %211, %cst_73 {dimension_numbers = #tpu.dot_dimension_numbers<[1], [0], [0], [1], [0, 0, 1, 1], [], []>} : vector<8x32xf32>, vector<32x128xf32>, vector<8x128xf32> -> vector<8x128xf32>
      %c0_74 = arith.constant 0 : index
      %c0_75 = arith.constant 0 : index
      %213 = vector.load %arg7[%c0_74, %c0_75] : memref<1x128xf32, #tpu.memory_space<vmem>>, vector<1x128xf32>
      %214 = vector.broadcast %213 : vector<1x128xf32> to vector<8x128xf32>
      %215 = arith.addf %212, %214 : vector<8x128xf32>
      %c0_76 = arith.constant 0 : index
      %c0_77 = arith.constant 0 : index
      %c0_78 = arith.constant 0 : index
      %216 = vector.load %arg8[%c0_76, %c0_77, %c0_78] : memref<1x8x128xf32, #tpu.memory_space<vmem>>, vector<1x8x128xf32>
      %217 = vector.shape_cast %216 : vector<1x8x128xf32> to vector<8x128xf32>
      %218 = vector.shape_cast %215 : vector<8x128xf32> to vector<1x8x128xf32>
      tpu.vector_store %arg8[%c0_76, %c0_77, %c0_78], %218 {strides = array<i32>} : memref<1x8x128xf32, #tpu.memory_space<vmem>>, vector<1x8x128xf32>,
    } else {
    }
    return
  }
  func.func @transform_0(%arg0: i32, %arg1: i32) -> (i32, i32, i32, i32) {
    %c0_i32 = arith.constant 0 : i32
    %c0_i32_0 = arith.constant 0 : i32
    %c0_i32_1 = arith.constant 0 : i32
    return %arg0, %arg1, %c0_i32, %c0_i32_0 : i32, i32, i32, i32
  }
  func.func @transform_1(%arg0: i32, %arg1: i32) -> (i32, i32) {
    %c0_i32 = arith.constant 0 : i32
    %c0_i32_0 = arith.constant 0 : i32
    %c0_i32_1 = arith.constant 0 : i32
    return %c0_i32, %c0_i32_0 : i32, i32
  }
  func.func @transform_2(%arg0: i32, %arg1: i32) -> (i32, i32) {
    %c0_i32 = arith.constant 0 : i32
    %c0_i32_0 = arith.constant 0 : i32
    %c0_i32_1 = arith.constant 0 : i32
    return %c0_i32, %c0_i32_0 : i32, i32
  }
  func.func @transform_3(%arg0: i32, %arg1: i32) -> (i32, i32) {
    %c0_i32 = arith.constant 0 : i32
    %c0_i32_0 = arith.constant 0 : i32
    %c0_i32_1 = arith.constant 0 : i32
    return %c0_i32, %c0_i32_0 : i32, i32
  }
  func.func @transform_4(%arg0: i32, %arg1: i32) -> (i32, i32) {
    %c0_i32 = arith.constant 0 : i32
    %c0_i32_0 = arith.constant 0 : i32
    %c0_i32_1 = arith.constant 0 : i32
    return %c0_i32, %c0_i32_0 : i32, i32
  }
  func.func @transform_5(%arg0: i32, %arg1: i32) -> (i32, i32) {
    %c0_i32 = arith.constant 0 : i32
    %c0_i32_0 = arith.constant 0 : i32
    %c0_i32_1 = arith.constant 0 : i32
    return %c0_i32, %c0_i32_0 : i32, i32
  }
  func.func @transform_6(%arg0: i32, %arg1: i32) -> (i32, i32, i32) {
    %c0_i32 = arith.constant 0 : i32
    %c0_i32_0 = arith.constant 0 : i32
    %c0_i32_1 = arith.constant 0 : i32
    return %arg0, %c0_i32, %c0_i32_0 : i32, i32, i32
  }
}

</mosaic_0001>

<bundles_post_ra>
// kernel: tpu_custom_call.1
= control target key start
LH: loop header
LB: loop body
LE: loop exit
PB: predicated region body
PF: predicated region fallthrough
CT: control target
= control target key end

     0   :  { %vm48_vm0 = vcmask 130048   ;;  %v1471_v3 = vmov 0.0|0.0   ;;  %vm28_vm1 = vcmask 261120   ;;  %vm1472_vm2 = vmmov 0   ;;  %s1719_s0 = inlined_call_operand.vmem [shape: f32[1,1,64,16], index: 0, kind: input, shape index: {}]   ;;  %s1720_s1 = inlined_call_operand.vmem [shape: f32[16,128], index: 1, kind: input, shape index: {}]   ;;  %s1721_s2 = inlined_call_operand.vmem [shape: f32[32,128], index: 2, kind: input, shape index: {}]   ;;  %s1722_s3 = inlined_call_operand.vmem [shape: f32[1,128], index: 3, kind: input, shape index: {}]   ;;  %s1723_s4 = inlined_call_operand.vmem [shape: f32[32,128], index: 4, kind: input, shape index: {}]   ;;  %s1724_s5 = inlined_call_operand.vmem [shape: f32[1,128], index: 5, kind: input, shape index: {}]   ;;  %s1725_s6 = inlined_call_operand.hbm [shape: f32[1,8,128], index: 6, kind: output, shape index: {}]  }
   0x1   :  { %v39_v0 = vld [vmem:[%s1720_s1] sm:$0xff]  ;;  %v40_v1 = vld [vmem:[%s1720_s1 + $0x8] sm:$0xff]  ;;  %1338 = vmatprep.subr.bf16.mxu1 %v1471_v3  ;;  %v188_v8 = vld [vmem:[%s1721_s2 + $0x10] sm:$0xff]  ;;  %v1473_v10 = vmov 0.0  }
   0x2   :  { %v186_v2 = vld [vmem:[%s1721_s2] sm:$0xff]  ;;  %v1334_v4 = vpack.c.bf16 %v40_v1, %v39_v0  ;;  %v187_v5 = vld [vmem:[%s1721_s2 + $0x8] sm:$0xff]  ;;  %v189_v9 = vld [vmem:[%s1721_s2 + $0x18] sm:$0xff]  ;;  %1243 = vmatprep.mubr.msk.f32.mxu1 %vm1472_vm2, %v1473_v10  ;;  %29 = vst.msk [vmem:[#allocation3] sm:$0xff] %vm28_vm1, %v1473_v10 }
   0x3   :  { %v31_v6 = vld [vmem:[%s1719_s0] sm:$0xff]  ;;  %v1529_v7 = vpack.c.bf16 %v187_v5, %v186_v2  ;;  %30 = vst.msk [vmem:[#allocation4] sm:$0xff] %vm28_vm1, %v1473_v10 }
   0x4   :  { %1223 = vmatprep.mubr.msk.f32.mxu0 %vm48_vm0, %v31_v6 }
   0x5   :  { %11 = vsyncpa [#allocation6], 0  ;;  %1335 = vmatprep.subr.bf16.mxu0 %v1334_v4  ;;  %1340 = vmatpush3.bf16.msra.mxu1 %v1529_v7  ;;  %v32_v11 = vld [vmem:[%s1719_s0 + $0x8] sm:$0xff]  ;;  %v1548_v12 = vpack.c.bf16 %v189_v9, %v188_v8  ;;  %v1569_v14 = vld [vmem:[%s1722_s3] ss:$0 sm:$0xff]  ;;  %s1474_s13 = smov 64  }
   0x6   :  { %1337 = vmatpush3.bf16.msra.mxu0 %v1334_v4  ;;  %1341 = vmatprep.subr.bf16.mxu1 %v1471_v3  ;;  %s1475_s3 = smov 32   ;;  %v33_v53 = vld [vmem:[%s1719_s0 + $0x10] sm:$0xff]  ;;  %v34_v54 = vld [vmem:[%s1719_s0 + $0x18] sm:$0xff]  ;;  %v35_v55 = vld [vmem:[%s1719_s0 + $0x20] sm:$0xff]  ;;  %s1476_s8 = smov 96  }
   0x7   :  { %1350 = vmatprep.subr.bf16.mxu0 %v1471_v3  ;;  %v36_v56 = vld [vmem:[%s1719_s0 + $0x28] sm:$0xff]  ;;  %v37_v57 = vld [vmem:[%s1719_s0 + $0x30] sm:$0xff]  ;;  %v38_v58 = vld [vmem:[%s1719_s0 + $0x38] sm:$0xff]  ;;  %s1477_s10 = smov [#allocation5]  }
   0x8   :  { %s1121_s11 = sshll.u32 %s1477_s10, 4  ;;  %s1122_s11 = int_to_ptr.vmem [resolvable:$true] %s1121_s11 }
   0x9   :  { %1224 = vmatmul.mubr.msk.f32.vlgmr.msra.gmra.mrb[0].mxu0 %vm48_vm0, %v32_v11  ;;  %1343 = vmatpush3.bf16.msra.mxu1 %v1548_v12  ;;  %v190_v13 = vld [vmem:[#allocation3] sm:$0xff]  ;;  %s1447_s2 = scalar_lea.vmem %s1122_s11, 128  ;;  %p1452_p1 = scmp.lt.s32.totalorder %s1122_s11, %s1122_s11 }
   0xa   :  { %1352 = vmatpush3.bf16.msra.mxu0 %v1529_v7  ;;  %1344 = vmatprep.subr.bf16.mxu1 %v1471_v3  ;;  %v191_v27 = vld [vmem:[#allocation4] sm:$0xff]  ;;  %p1448_p0 = scmp.ne.s32.totalorder %s1122_s11, %s1447_s2  ;;  %p1453_p2 = scmp.lt.s32.totalorder %s1447_s2, %s1447_s2 }
   0xb   :  { %1353 = vmatprep.subr.bf16.mxu0 %v1471_v3  ;;  %1226 = vmatprep.mubr.msk.f32.mxu0 %vm48_vm0, %v33_v53 }
   0xc   :  { %1244 = vmatmul.mubr.msk.f32.vlgmr.msra.gmra.mrb[0].mxu1 %vm28_vm1, %v190_v13  ;;  %p1454_p3 = por %p1453_p2, %p1452_p1 }
   0xd   :  { %1346 = vmatpush3.bf16.msra.mxu1 %v1529_v7  ;;  %1254 = vmatprep.mubr.msk.f32.mxu1 %vm1472_vm2, %v1473_v10 }
   0xe   :  { %1347 = vmatprep.subr.bf16.mxu1 %v1471_v3  ;;  %1355 = vmatpush3.bf16.msra.mxu0 %v1548_v12  ;;  %p1455_p4 = pnand %p1454_p3, %p1448_p0 }
   0xf   :  { %1362 = vmatprep.subr.bf16.mxu0 %v1471_v3  ;;  %1227 = vmatmul.mubr.msk.f32.gmra.mrb[2].mxu0 %vm48_vm0, %v34_v54 }
  0x10   :  { %1229 = vmatprep.mubr.msk.f32.mxu0 %vm48_vm0, %v35_v55 }
  0x11   :  { %1349 = vmatpush3.bf16.msra.mxu1 %v1548_v12 }
  0x12   :  { %1356 = vmatprep.subr.bf16.mxu1 %v1471_v3 }
  0x13   :  { %1230 = vmatmul.mubr.msk.f32.gmra.mrb[4].mxu0 %vm48_vm0, %v36_v56 }
  0x14   :  { %1232 = vmatprep.mubr.msk.f32.mxu0 %vm48_vm0, %v37_v57 }
  0x17   :  { %1233 = vmatmul.mubr.msk.f32.gmra.mrb[6].mxu0 %vm48_vm0, %v38_v58 }
  0x18   :  { %1265 = vmatprep.mubr.msk.f32.mxu0 %vm1472_vm2, %v1473_v10 }
  0xdc   :  { %v1225_v15 = vpop.f32.mrb[0].mxu0 }
  0xdd   :  { %v139_v16 = vpop.f32.mrb[1].mxu0  ;;  %v145_v38 = vadd.f32 %v1225_v15, %v1569_v14 }
  0xde   :  { %v140_v17 = vadd.f32 %v1569_v14, %v139_v16 }
  0xdf   :  { %v263_v18 = vpop.f32.mrb[0].mxu1 }
  0xe0   :  { %v267_v19 = vadd.f32 %v263_v18, %v140_v17  ;;  %v1245_v20 = vpop.f32.mrb[1].mxu1 }
  0xe2   :  { %v1139_v21 = vmul.f32 -1.442695, %v267_v19  ;;  %v1228_v62 = vpop.f32.mrb[2].mxu0 }
  0xe3   :  { %v149_v63 = vpop.f32.mrb[3].mxu0 }
  0xe4   :  { %1399 = vpow2.f32 %v1139_v21  ;;  %v150_v6 = vadd.f32 %v1569_v14, %v149_v63 }
  0xe6   :  { %v1615_v0 = vpop.f32.mrb[4].mxu0 }
  0xe7   :  { %v1617_v1 = vpop.f32.mrb[5].mxu0 }
  0xea   :  { %v1619_v2 = vpop.f32.mrb[6].mxu0 }
  0xeb   :  { %v1621_v4 = vpop.f32.mrb[7].mxu0 }
  0xee   :  { %v1400_v22 = vpop.eup %1399 }
  0xef   :  { %v271_v23 = vadd.f32 1.0, %v1400_v22 }
  0xf1   :  { %1401 = vrcp.f32 %v271_v23 }
  0xfb   :  { %v1402_v24 = vpop.eup %1401 }
  0xfc   :  { %v274_v25 = vmul.f32 2.0, %v1402_v24 }
  0xfe   :  { %v1140_v26 = vadd.f32 -1.0, %v274_v25 }
 0x100   :  { %282 = vrot.lane.b32.xlu0 %v1140_v26, %s1474_s13 }
 0x104   :  { %277 = vrot.lane.b32.xlu0 %v191_v27, %s1475_s3 }
 0x172   :  { %v283_v28 = vpop.permute.xlu0 %282 }
 0x173   :  { %v285_v29 = vmul.f32 %v1402_v24, %v283_v28 }
 0x175   :  { %287 = vrot.lane.b32.xlu1 %v285_v29, %s1475_s3  ;;  %v155_v29 = vadd.f32 %v1228_v62, %v1569_v14 }
 0x176   :  { %v278_v30 = vpop.permute.xlu0 %277 }
 0x177   :  { %v280_v31 = vmul.f32 %v1402_v24, %v278_v30 }
 0x1e7   :  { %v288_v32 = vpop.permute.xlu1 %287 }
 0x1e8   :  { %v290_v33 = vadd.f32 %v288_v32, %v280_v31 }
 0x1ea   :  { %1403 = vtanh.f32 %v290_v33 }
 0x1f4   :  { %v1404_v34 = vpop.eup %1403 }
 0x1f5   :  { %293 = vrot.lane.b32.xlu1 %v1404_v34, %s1474_s13 }
 0x267   :  { %v294_v35 = vpop.permute.xlu1 %293 }
 0x268   :  { %v296_v36 = vmul.f32 %v1402_v24, %v294_v35 }
 0x26a   :  { %300 = vrot.lane.b32.xlu0 %v296_v36, %s1475_s3 }
 0x2dc   :  { %v301_v37 = vpop.permute.xlu0 %300 }
 0x2dd   :  { %1255 = vmatmul.mubr.msk.f32.vlgmr.msra.gmra.mrb[2].mxu1 %vm28_vm1, %v301_v37 }
 0x2de   :  { %1358 = vmatpush3.bf16.msra.mxu1 %v1529_v7  ;;  %1276 = vmatprep.mubr.msk.f32.mxu1 %vm1472_vm2, %v1473_v10 }
 0x2df   :  { %1359 = vmatprep.subr.bf16.mxu1 %v1471_v3 }
 0x2e2   :  { %1361 = vmatpush3.bf16.msra.mxu1 %v1548_v12 }
 0x2e3   :  { %1368 = vmatprep.subr.bf16.mxu1 %v1471_v3 }
 0x3b0   :  { %v370_v39 = vpop.f32.mrb[2].mxu1 }
 0x3b1   :  { %v374_v40 = vadd.f32 %v370_v39, %v145_v38  ;;  %v1256_v41 = vpop.f32.mrb[3].mxu1 }
 0x3b3   :  { %v1142_v42 = vmul.f32 -1.442695, %v374_v40 }
 0x3b5   :  { %1405 = vpow2.f32 %v1142_v42 }
 0x3bf   :  { %v1406_v43 = vpop.eup %1405 }
 0x3c0   :  { %v378_v44 = vadd.f32 1.0, %v1406_v43 }
 0x3c2   :  { %1407 = vrcp.f32 %v378_v44 }
 0x3cc   :  { %v1408_v45 = vpop.eup %1407 }
 0x3cd   :  { %v381_v46 = vmul.f32 2.0, %v1408_v45  ;;  %v383_v50 = vmul.f32 %v1408_v45, %v290_v33 }
 0x3cf   :  { %v1143_v47 = vadd.f32 -1.0, %v381_v46 }
 0x3d1   :  { %385 = vrot.lane.b32.xlu1 %v1143_v47, %s1474_s13 }
 0x443   :  { %v386_v48 = vpop.permute.xlu1 %385 }
 0x444   :  { %v388_v49 = vmul.f32 %v1408_v45, %v386_v48  ;;  %v160_v48 = vadd.f32 %v1569_v14, %v1617_v1 }
 0x446   :  { %390 = vrot.lane.b32.xlu0 %v388_v49, %s1475_s3 }
 0x4b8   :  { %v391_v51 = vpop.permute.xlu0 %390 }
 0x4b9   :  { %v393_v52 = vadd.f32 %v391_v51, %v383_v50 }
 0x4bb   :  { %1409 = vtanh.f32 %v393_v52 }
 0x4c5   :  { %v1410_v59 = vpop.eup %1409 }
 0x4c6   :  { %396 = vrot.lane.b32.xlu1 %v1410_v59, %s1474_s13 }
 0x538   :  { %v397_v60 = vpop.permute.xlu1 %396 }
 0x539   :  { %v399_v61 = vmul.f32 %v1408_v45, %v397_v60 }
 0x53b   :  { %403 = vrot.lane.b32.xlu0 %v399_v61, %s1475_s3 }
 0x5ad   :  { %v404_v5 = vpop.permute.xlu0 %403 }
 0x5ae   :  { %1266 = vmatmul.mubr.msk.f32.vlgmr.msra.gmra.mrb[8].mxu0 %vm28_vm1, %v404_v5 }
 0x5af   :  { %1364 = vmatpush3.bf16.msra.mxu0 %v1529_v7  ;;  %1287 = vmatprep.mubr.msk.f32.mxu0 %vm1472_vm2, %v1473_v10 }
 0x5b0   :  { %1365 = vmatprep.subr.bf16.mxu0 %v1471_v3 }
 0x5b3   :  { %1367 = vmatpush3.bf16.msra.mxu0 %v1548_v12 }
 0x5b4   :  { %1374 = vmatprep.subr.bf16.mxu0 %v1471_v3 }
 0x681   :  { %v473_v8 = vpop.f32.mrb[8].mxu0 }
 0x682   :  { %v477_v9 = vadd.f32 %v473_v8, %v150_v6  ;;  %v1267_v11 = vpop.f32.mrb[9].mxu0  ;;  %v165_v8 = vadd.f32 %v1615_v0, %v1569_v14 }
 0x684   :  { %v1145_v13 = vmul.f32 -1.442695, %v477_v9 }
 0x686   :  { %1411 = vpow2.f32 %v1145_v13 }
 0x690   :  { %v1412_v15 = vpop.eup %1411 }
 0x691   :  { %v481_v16 = vadd.f32 1.0, %v1412_v15 }
 0x693   :  { %1413 = vrcp.f32 %v481_v16 }
 0x69d   :  { %v1414_v17 = vpop.eup %1413 }
 0x69e   :  { %v484_v18 = vmul.f32 2.0, %v1414_v17  ;;  %v486_v22 = vmul.f32 %v1414_v17, %v393_v52 }
 0x6a0   :  { %v1146_v19 = vadd.f32 -1.0, %v484_v18 }
 0x6a2   :  { %488 = vrot.lane.b32.xlu1 %v1146_v19, %s1474_s13 }
 0x714   :  { %v489_v20 = vpop.permute.xlu1 %488 }
 0x715   :  { %v491_v21 = vmul.f32 %v1414_v17, %v489_v20 }
 0x717   :  { %493 = vrot.lane.b32.xlu0 %v491_v21, %s1475_s3 }
 0x789   :  { %v494_v23 = vpop.permute.xlu0 %493 }
 0x78a   :  { %v496_v24 = vadd.f32 %v494_v23, %v486_v22 }
 0x78c   :  { %1415 = vtanh.f32 %v496_v24 }
 0x796   :  { %v1416_v25 = vpop.eup %1415 }
 0x797   :  { %499 = vrot.lane.b32.xlu1 %v1416_v25, %s1474_s13 }
 0x809   :  { %v500_v26 = vpop.permute.xlu1 %499 }
 0x80a   :  { %v502_v27 = vmul.f32 %v1414_v17, %v500_v26 }
 0x80c   :  { %506 = vrot.lane.b32.xlu0 %v502_v27, %s1475_s3  ;;  %v170_v27 = vadd.f32 %v1569_v14, %v1621_v4 }
 0x87e   :  { %v507_v28 = vpop.permute.xlu0 %506 }
 0x87f   :  { %1277 = vmatmul.mubr.msk.f32.vlgmr.msra.gmra.mrb[4].mxu1 %vm28_vm1, %v507_v28 }
 0x880   :  { %1370 = vmatpush3.bf16.msra.mxu1 %v1529_v7  ;;  %1298 = vmatprep.mubr.msk.f32.mxu1 %vm1472_vm2, %v1473_v10 }
 0x881   :  { %1371 = vmatprep.subr.bf16.mxu1 %v1471_v3 }
 0x884   :  { %1373 = vmatpush3.bf16.msra.mxu1 %v1548_v12 }
 0x885   :  { %1380 = vmatprep.subr.bf16.mxu1 %v1471_v3 }
 0x952   :  { %v576_v30 = vpop.f32.mrb[4].mxu1 }
 0x953   :  { %v580_v31 = vadd.f32 %v576_v30, %v155_v29  ;;  %v1278_v32 = vpop.f32.mrb[5].mxu1 }
 0x955   :  { %v1148_v33 = vmul.f32 -1.442695, %v580_v31 }
 0x957   :  { %1417 = vpow2.f32 %v1148_v33 }
 0x961   :  { %v1418_v34 = vpop.eup %1417 }
 0x962   :  { %v584_v35 = vadd.f32 1.0, %v1418_v34 }
 0x964   :  { %1419 = vrcp.f32 %v584_v35 }
 0x96e   :  { %v1420_v36 = vpop.eup %1419 }
 0x96f   :  { %v587_v37 = vmul.f32 2.0, %v1420_v36  ;;  %v589_v41 = vmul.f32 %v1420_v36, %v496_v24 }
 0x971   :  { %v1149_v38 = vadd.f32 -1.0, %v587_v37 }
 0x973   :  { %591 = vrot.lane.b32.xlu1 %v1149_v38, %s1474_s13 }
 0x9e5   :  { %v592_v39 = vpop.permute.xlu1 %591 }
 0x9e6   :  { %v594_v40 = vmul.f32 %v1420_v36, %v592_v39 }
 0x9e8   :  { %596 = vrot.lane.b32.xlu0 %v594_v40, %s1475_s3 }
 0xa5a   :  { %v597_v42 = vpop.permute.xlu0 %596 }
 0xa5b   :  { %v599_v43 = vadd.f32 %v597_v42, %v589_v41 }
 0xa5d   :  { %1421 = vtanh.f32 %v599_v43 }
 0xa67   :  { %v1422_v44 = vpop.eup %1421 }
 0xa68   :  { %602 = vrot.lane.b32.xlu1 %v1422_v44, %s1474_s13  ;;  %v175_v44 = vadd.f32 %v1619_v2, %v1569_v14  ;;  %v1031_v2 = vld [vmem:[%s1723_s4] sm:$0xff] }
 0xada   :  { %v603_v45 = vpop.permute.xlu1 %602 }
 0xadb   :  { %v605_v46 = vmul.f32 %v1420_v36, %v603_v45 }
 0xadd   :  { %609 = vrot.lane.b32.xlu0 %v605_v46, %s1475_s3 }
 0xb4f   :  { %v610_v47 = vpop.permute.xlu0 %609 }
 0xb50   :  { %1288 = vmatmul.mubr.msk.f32.vlgmr.msra.gmra.mrb[10].mxu0 %vm28_vm1, %v610_v47 }
 0xb51   :  { %1376 = vmatpush3.bf16.msra.mxu0 %v1529_v7  ;;  %1309 = vmatprep.mubr.msk.f32.mxu0 %vm1472_vm2, %v1473_v10 }
 0xb52   :  { %1377 = vmatprep.subr.bf16.mxu0 %v1471_v3 }
 0xb55   :  { %1379 = vmatpush3.bf16.msra.mxu0 %v1548_v12 }
 0xb56   :  { %1386 = vmatprep.subr.bf16.mxu0 %v1471_v3 }
 0xc23   :  { %v679_v49 = vpop.f32.mrb[10].mxu0 }
 0xc24   :  { %v683_v50 = vadd.f32 %v679_v49, %v160_v48  ;;  %v1289_v51 = vpop.f32.mrb[11].mxu0 }
 0xc26   :  { %v1151_v52 = vmul.f32 -1.442695, %v683_v50 }
 0xc28   :  { %1423 = vpow2.f32 %v1151_v52 }
 0xc32   :  { %v1424_v53 = vpop.eup %1423 }
 0xc33   :  { %v687_v54 = vadd.f32 1.0, %v1424_v53 }
 0xc35   :  { %1425 = vrcp.f32 %v687_v54 }
 0xc3f   :  { %v1426_v55 = vpop.eup %1425 }
 0xc40   :  { %v690_v56 = vmul.f32 2.0, %v1426_v55  ;;  %v692_v60 = vmul.f32 %v1426_v55, %v599_v43 }
 0xc42   :  { %v1152_v57 = vadd.f32 -1.0, %v690_v56 }
 0xc44   :  { %694 = vrot.lane.b32.xlu1 %v1152_v57, %s1474_s13 }
 0xcb6   :  { %v695_v58 = vpop.permute.xlu1 %694 }
 0xcb7   :  { %v697_v59 = vmul.f32 %v1426_v55, %v695_v58  ;;  %v1032_v58 = vld [vmem:[%s1723_s4 + $0x8] sm:$0xff] }
 0xcb9   :  { %699 = vrot.lane.b32.xlu0 %v697_v59, %s1475_s3  ;;  %v1033_v59 = vld [vmem:[%s1723_s4 + $0x10] sm:$0xff] }
 0xd2b   :  { %v700_v61 = vpop.permute.xlu0 %699 }
 0xd2c   :  { %v702_v62 = vadd.f32 %v700_v61, %v692_v60  ;;  %v1387_v60 = vpack.c.bf16 %v1032_v58, %v1031_v2  ;;  %v1034_v61 = vld [vmem:[%s1723_s4 + $0x18] sm:$0xff] }
 0xd2e   :  { %1427 = vtanh.f32 %v702_v62 }
 0xd38   :  { %v1428_v63 = vpop.eup %1427 }
 0xd39   :  { %705 = vrot.lane.b32.xlu1 %v1428_v63, %s1474_s13 }
 0xdab   :  { %v706_v1 = vpop.permute.xlu1 %705 }
 0xdac   :  { %v708_v5 = vmul.f32 %v1426_v55, %v706_v1 }
 0xdae   :  { %712 = vrot.lane.b32.xlu0 %v708_v5, %s1475_s3 }
 0xe20   :  { %v713_v6 = vpop.permute.xlu0 %712 }
 0xe21   :  { %1299 = vmatmul.mubr.msk.f32.vlgmr.msra.gmra.mrb[6].mxu1 %vm28_vm1, %v713_v6 }
 0xe22   :  { %1382 = vmatpush3.bf16.msra.mxu1 %v1529_v7  ;;  %1320 = vmatprep.mubr.msk.f32.mxu1 %vm1472_vm2, %v1473_v10 }
 0xe23   :  { %1383 = vmatprep.subr.bf16.mxu1 %v1471_v3 }
 0xe26   :  { %1385 = vmatpush3.bf16.msra.mxu1 %v1548_v12 }
 0xef4   :  { %v782_v9 = vpop.f32.mrb[6].mxu1 }
 0xef5   :  { %v786_v11 = vadd.f32 %v782_v9, %v165_v8  ;;  %v1300_v13 = vpop.f32.mrb[7].mxu1 }
 0xef7   :  { %v1154_v15 = vmul.f32 -1.442695, %v786_v11 }
 0xef9   :  { %1429 = vpow2.f32 %v1154_v15 }
 0xf03   :  { %v1430_v16 = vpop.eup %1429 }
 0xf04   :  { %v790_v17 = vadd.f32 1.0, %v1430_v16 }
 0xf06   :  { %1431 = vrcp.f32 %v790_v17 }
 0xf10   :  { %v1432_v18 = vpop.eup %1431 }
 0xf11   :  { %v793_v7 = vmul.f32 2.0, %v1432_v18  ;;  %v795_v12 = vmul.f32 %v1432_v18, %v702_v62  ;;  %v1390_v62 = vpack.c.bf16 %v1034_v61, %v1033_v59 }
 0xf13   :  { %v1155_v19 = vadd.f32 -1.0, %v793_v7 }
 0xf15   :  { %797 = vrot.lane.b32.xlu1 %v1155_v19, %s1474_s13 }
 0xf87   :  { %v798_v20 = vpop.permute.xlu1 %797 }
 0xf88   :  { %v800_v21 = vmul.f32 %v1432_v18, %v798_v20 }
 0xf8a   :  { %802 = vrot.lane.b32.xlu0 %v800_v21, %s1475_s3 }
 0xffc   :  { %v803_v22 = vpop.permute.xlu0 %802 }
 0xffd   :  { %v805_v0 = vadd.f32 %v803_v22, %v795_v12 }
 0xfff   :  { %1433 = vtanh.f32 %v805_v0 }
0x1009   :  { %v1434_v23 = vpop.eup %1433 }
0x100a   :  { %808 = vrot.lane.b32.xlu1 %v1434_v23, %s1474_s13 }
0x107c   :  { %v809_v24 = vpop.permute.xlu1 %808 }
0x107d   :  { %v811_v25 = vmul.f32 %v1432_v18, %v809_v24 }
0x107f   :  { %815 = vrot.lane.b32.xlu0 %v811_v25, %s1475_s3 }
0x10f1   :  { %v816_v26 = vpop.permute.xlu0 %815 }
0x10f2   :  { %1310 = vmatmul.mubr.msk.f32.vlgmr.msra.gmra.mrb[12].mxu0 %vm28_vm1, %v816_v26 }
0x10f3   :  { %1331 = vmatprep.mubr.msk.f32.mxu0 %vm1472_vm2, %v1473_v10  ;;  %1388 = vmatpush3.bf16.msra.mxu0 %v1387_v60 }
0x10f4   :  { %1389 = vmatprep.subr.bf16.mxu0 %v1471_v3  ;;  %v1162_v3 = vld [vmem:[%s1724_s5] ss:$0 sm:$0xff] }
0x10f7   :  { %1391 = vmatpush3.bf16.msra.mxu0 %v1390_v62 }
0x11c5   :  { %v885_v28 = vpop.f32.mrb[12].mxu0 }
0x11c6   :  { %v889_v29 = vadd.f32 %v885_v28, %v170_v27  ;;  %v1311_v30 = vpop.f32.mrb[13].mxu0 }
0x11c8   :  { %v1157_v31 = vmul.f32 -1.442695, %v889_v29 }
0x11ca   :  { %1435 = vpow2.f32 %v1157_v31 }
0x11d4   :  { %v1436_v32 = vpop.eup %1435 }
0x11d5   :  { %v893_v33 = vadd.f32 1.0, %v1436_v32 }
0x11d7   :  { %1437 = vrcp.f32 %v893_v33 }
0x11e1   :  { %v1438_v34 = vpop.eup %1437 }
0x11e2   :  { %v896_v35 = vmul.f32 2.0, %v1438_v34  ;;  %v898_v10 = vmul.f32 %v1438_v34, %v805_v0 }
0x11e4   :  { %v1158_v36 = vadd.f32 -1.0, %v896_v35 }
0x11e6   :  { %900 = vrot.lane.b32.xlu1 %v1158_v36, %s1474_s13 }
0x1258   :  { %v901_v37 = vpop.permute.xlu1 %900 }
0x1259   :  { %v903_v38 = vmul.f32 %v1438_v34, %v901_v37 }
0x125b   :  { %905 = vrot.lane.b32.xlu0 %v903_v38, %s1475_s3 }
0x12cd   :  { %v906_v39 = vpop.permute.xlu0 %905 }
0x12ce   :  { %v908_v4 = vadd.f32 %v906_v39, %v898_v10 }
0x12d0   :  { %1439 = vtanh.f32 %v908_v4 }
0x12da   :  { %v1440_v40 = vpop.eup %1439 }
0x12db   :  { %911 = vrot.lane.b32.xlu1 %v1440_v40, %s1474_s13 }
0x134d   :  { %v912_v41 = vpop.permute.xlu1 %911 }
0x134e   :  { %v914_v42 = vmul.f32 %v1438_v34, %v912_v41 }
0x1350   :  { %918 = vrot.lane.b32.xlu0 %v914_v42, %s1475_s3 }
0x13c2   :  { %v919_v43 = vpop.permute.xlu0 %918 }
0x13c3   :  { %1321 = vmatmul.mubr.msk.f32.vlgmr.msra.gmra.mrb[8].mxu1 %vm28_vm1, %v919_v43 }
0x1496   :  { %v988_v45 = vpop.f32.mrb[8].mxu1 }
0x1497   :  { %v992_v46 = vadd.f32 %v988_v45, %v175_v44  ;;  %v1322_v47 = vpop.f32.mrb[9].mxu1 }
0x1499   :  { %v1160_v48 = vmul.f32 -1.442695, %v992_v46 }
0x149b   :  { %1441 = vpow2.f32 %v1160_v48 }
0x14a5   :  { %v1442_v49 = vpop.eup %1441 }
0x14a6   :  { %v996_v50 = vadd.f32 1.0, %v1442_v49 }
0x14a8   :  { %1443 = vrcp.f32 %v996_v50 }
0x14b2   :  { %v1444_v51 = vpop.eup %1443 }
0x14b3   :  { %v999_v52 = vmul.f32 2.0, %v1444_v51  ;;  %v1001_v56 = vmul.f32 %v1444_v51, %v908_v4 }
0x14b5   :  { %v1161_v53 = vadd.f32 -1.0, %v999_v52 }
0x14b7   :  { %1003 = vrot.lane.b32.xlu1 %v1161_v53, %s1474_s13 }
0x1529   :  { %v1004_v54 = vpop.permute.xlu1 %1003 }
0x152a   :  { %v1006_v55 = vmul.f32 %v1444_v51, %v1004_v54 }
0x152c   :  { %1008 = vrot.lane.b32.xlu0 %v1006_v55, %s1475_s3 }
0x159e   :  { %v1009_v57 = vpop.permute.xlu0 %1008 }
0x159f   :  { %v1011_v14 = vadd.f32 %v1009_v57, %v1001_v56 }
0x15a1   :  { %1445 = vtanh.f32 %v1011_v14 }
0x15ab   :  { %v1446_v63 = vpop.eup %1445 }
0x15ac   :  { %1014 = vrot.lane.b32.xlu1 %v1446_v63, %s1474_s13 }
0x15b0   :  { %1024 = vrot.lane.b32.xlu1 %v1011_v14, %s1476_s8 }
0x161e   :  { %v1015_v1 = vpop.permute.xlu1 %1014 }
0x161f   :  { %v1017_v5 = vmul.f32 %v1444_v51, %v1015_v1 }
0x1621   :  { %1019 = vrot.lane.b32.xlu0 %v1017_v5, %s1475_s3 }
0x1622   :  { %v1025_v6 = vpop.permute.xlu1 %1024 }
0x1623   :  { %1027 = vst.msk [vmem:[#allocation4] sm:$0xff] %vm28_vm1, %v1025_v6 }
0x1693   :  { %v1020_v8 = vpop.permute.xlu0 %1019 }
0x1694   :  { %1022 = vst.msk [vmem:[#allocation3] sm:$0xff] %vm28_vm1, %v1020_v8  ;;  %1332 = vmatmul.mubr.msk.f32.vlgmr.msra.gmra.mrb[14].mxu0 %vm28_vm1, %v1020_v8 }
0x1767   :  { %v1110_v9 = vpop.f32.mrb[14].mxu0 }
0x1768   :  { %v1111_v11 = vadd.f32 %v1162_v3, %v1110_v9  ;;  %v1333_v13 = vpop.f32.mrb[15].mxu0 }
0x176a   :  { %1114 = vst [vmem:[#allocation5] sm:$0xff] %v1111_v11 }
0x176b   :  { %1458 = shalt.err (!%p1455_p4)
}
0x176c   :  { %s1459_s3 = scalar_lea.hbm %s1725_s6, 128 }
0x176d   :  { %p1460_p5 = scmp.ne.s32.totalorder %s1725_s6, %s1459_s3  ;;  %p1463_p6 = scmp.lt.u32.totalorder %s1459_s3, %s1725_s6 }
0x176f   :  { %p1465_p7 = pnand %p1463_p6, %p1460_p5 }
0x1771   :  { %1468 = shalt.err (!%p1465_p7)
}
0x1772   :  { %1124 = dma.vmem_to_hbm [thread:$0]  %s1122_s11, 128, %s1725_s6, [#allocation6]  }
0x1773   :  { %1469 = dma.done.wait [#allocation6], 128  }
0x1774   :  { %1470 = vsyncadd [#allocation6], 4294967168 }
0x1775   :  { %1128 = vsyncpa [#allocation6], 1 }

</bundles_post_ra>
